<compile_context>
chip_gen: v5e
topology: v5e:2x2
jax: 0.10.0
libtpu: 0.0.40
codegen_flags: <defaults>
</compile_context>

<pallas_src>
import functools

import numpy as np
import jax
import jax.numpy as jnp
from jax.experimental import pallas as pl
from jax.experimental.pallas import tpu as pltpu


def _round_up(x: int, m: int) -> int:
    return ((x + m - 1) // m) * m


def _choose_tk(K: int) -> int:
    # Largest reduction tile <= 2048: long DMA bursts + few grid steps, still tiny in VMEM.
    return min(2048, _round_up(K, 128))


def prepare_fused_params(w_mu, b_mu, w_std, b_std, weight_dtype=jnp.bfloat16):
    """One-time (init-time) fusion of fc_mu / fc_std.

    Returns:
      w_fused : (K_pad, N) weight_dtype, columns [0:D] = W_mu, [D:2D] = W_std, rest zero.
      b_fused : (1, N) float32 with the same packing.
    N = round_up(2*D, 128): for the module default D=32 this is one 128-lane vreg instead
    of 2x128 padded columns (4x less weight HBM traffic per forward).
    """
    K, D = w_mu.shape
    assert w_std.shape == (K, D) and b_mu.shape == (D,) and b_std.shape == (D,)
    tk = _choose_tk(K)
    K_pad = _round_up(K, tk)
    N = _round_up(2 * D, 128)

    w_fused = (jnp.zeros((K_pad, N), jnp.float32)
               .at[:K, :D].set(w_mu.astype(jnp.float32))
               .at[:K, D:2 * D].set(w_std.astype(jnp.float32))
               .astype(weight_dtype))
    b_fused = (jnp.zeros((1, N), jnp.float32)
               .at[0, :D].set(b_mu.astype(jnp.float32))
               .at[0, D:2 * D].set(b_std.astype(jnp.float32)))
    return w_fused, b_fused


def _reparam_kernel(x_ref, w_ref, b_ref, eps_ref,
                    z_ref, mu_ref, logvar_ref, acc_ref, *, d):
    """Fused [fc_mu | fc_std] matmul + reparameterization trick.

    Grid = (B_pad // tm, K_pad // tk); axis 1 (K) is the reduction axis.
      x_ref   : (tm, tk)  bf16 input tile
      w_ref   : (tk, N)   bf16 fused weight tile, N = round_up(2*d, 128)
      b_ref   : (1, N)    f32 fused bias
      eps_ref : (tm, d)   f32 N(0,1) noise tile
      z/mu/logvar_ref : (tm, d) f32 outputs
      acc_ref : (tm, N)   f32 accumulator (VMEM scratch, persists across K steps)
    """
    k = pl.program_id(1)

    @pl.when(k == 0)
    def _init():
        # Fold the bias into the accumulator init (drops the extra add at finalize).
        acc_ref[...] = jnp.broadcast_to(b_ref[...], acc_ref.shape)

    # One MXU pass produces mu and logvar side by side; accumulation stays f32.
    acc_ref[...] += jnp.dot(x_ref[...], w_ref[...],
                            preferred_element_type=jnp.float32)

    @pl.when(k == pl.num_programs(1) - 1)
    def _finalize():
        out = acc_ref[...]                 # (tm, N) f32, bias already included
        mu = out[:, :d]                    # packed layout: mu at lanes [0:d]
        logvar = out[:, d:2 * d]           #               logvar at lanes [d:2d]
        std = jnp.exp(0.5 * logvar)        # f32 elementwise (EUP)
        z = eps_ref[...] * std + mu
        z_ref[...] = z.astype(z_ref.dtype)
        mu_ref[...] = mu.astype(mu_ref.dtype)
        logvar_ref[...] = logvar.astype(logvar_ref.dtype)


def reparameterize_forward(x_nchw, w_fused, b_fused, eps):
    """x_nchw: (B, C, H, W); w_fused/b_fused from prepare_fused_params(); eps: (B, D) ~ N(0,1).

    Returns (z, mu, logvar), each (B, D) float32.
    """
    B = x_nchw.shape[0]
    K = int(np.prod(x_nchw.shape[1:]))
    K_pad, N = w_fused.shape
    D = eps.shape[1]
    assert N == _round_up(2 * D, 128)

    tk = _choose_tk(K)
    assert K_pad == _round_up(K, tk), "w_fused was prepared for a different K"

    # One batch tile whenever possible: the weight index_map depends only on k, so every
    # additional batch tile would re-stream the entire fused weight from HBM.
    B_pad8 = _round_up(B, 8)
    tm = min(512, B_pad8)
    B_pad = _round_up(B_pad8, tm)

    x = x_nchw.reshape(B, K).astype(jnp.bfloat16)   # same row-major flatten as torch .view
    if (B_pad, K_pad) != (B, K):
        x = jnp.zeros((B_pad, K_pad), jnp.bfloat16).at[:B, :K].set(x)
    eps_f = eps.astype(jnp.float32)
    if B_pad != B:
        eps_f = jnp.zeros((B_pad, D), jnp.float32).at[:B, :].set(eps_f)

    grid = (B_pad // tm, K_pad // tk)

    # Explicit scoped-VMEM budget (v5e default is 16 MiB): double-buffered x/w/eps/output
    # tiles + f32 accumulator, 2x headroom, clamped to [32 MiB, 48 MiB] (safe on all gens).
    d_lanes = _round_up(D, 128)
    step_bytes = (2 * tm * tk * 2 + 2 * tk * N * 2 + 2 * 8 * N * 4
                  + 2 * tm * d_lanes * 4 + 2 * 3 * tm * d_lanes * 4 + tm * N * 4)
    vmem_limit = int(min(max(2 * step_bytes, 32 * 1024 * 1024), 48 * 1024 * 1024))

    out_sds = tuple(jax.ShapeDtypeStruct((B_pad, D), jnp.float32) for _ in range(3))

    z, mu, logvar = pl.pallas_call(
        functools.partial(_reparam_kernel, d=D),
        out_shape=out_sds,
        grid_spec=pltpu.PrefetchScalarGridSpec(
            num_scalar_prefetch=0,
            grid=grid,
            in_specs=[
                pl.BlockSpec((tm, tk), lambda i, k: (i, k)),   # x tile (bf16)
                # If xprof shows exposed weight DMA, add pipeline_mode=pl.Buffered(3) here.
                pl.BlockSpec((tk, N), lambda i, k: (k, 0)),    # fused bf16 weight (k only)
                pl.BlockSpec((1, N), lambda i, k: (0, 0)),     # fused f32 bias
                pl.BlockSpec((tm, D), lambda i, k: (i, 0)),    # eps (f32)
            ],
            out_specs=[
                pl.BlockSpec((tm, D), lambda i, k: (i, 0)),    # z
                pl.BlockSpec((tm, D), lambda i, k: (i, 0)),    # mu
                pl.BlockSpec((tm, D), lambda i, k: (i, 0)),    # logvar
            ],
            scratch_shapes=[pltpu.VMEM((tm, N), jnp.float32)],
        ),
        compiler_params=pltpu.CompilerParams(
            # Batch axis "parallel" (one tile for small B), reduction axis "arbitrary".
            # TODO(synk): for v7x dual-TC utilization at large D, split the packed output
            # columns (mu half / logvar half) across a parallel axis instead of batch.
            dimension_semantics=("parallel", "arbitrary"),
            vmem_limit_bytes=vmem_limit,
        ),
    )(x, w_fused, b_fused, eps_f)

    return z[:B, :], mu[:B, :], logvar[:B, :]


def init_linear_params(key, in_features, out_features):
    """torch nn.Linear default init (U(+-1/sqrt(fan_in))); weight stored as (K, D) = W^T."""
    kw, kb = jax.random.split(key)
    bound = 1.0 / np.sqrt(in_features)
    w = jax.random.uniform(kw, (in_features, out_features), jnp.float32, -bound, bound)
    b = jax.random.uniform(kb, (out_features,), jnp.float32, -bound, bound)
    return w, b


if __name__ == "__main__":
    # Small shapes consistent with the module: encoder feature map (B, C, H, W).
    B, C, H, W = 2, 4, 16, 16          # n_flatten = 1024 -> exercises the K tiling path
    out_dim = 32

    key = jax.random.PRNGKey(0)
    k_x, k_mu, k_std, k_eps = jax.random.split(key, 4)

    x = jax.random.normal(k_x, (B, C, H, W), jnp.float32)
    n_flatten = C * H * W

    w_mu, b_mu = init_linear_params(k_mu, n_flatten, out_dim)
    w_std, b_std = init_linear_params(k_std, n_flatten, out_dim)

    # eps ~ N(0,1) generated in JAX glue (randn_like equivalent) and passed in so the kernel
    # output is deterministic and checkable.
    eps = jax.random.normal(k_eps, (B, out_dim), jnp.float32)

    # One-time parameter fusion/padding (hoisted out of the per-forward path).
    w_fused, b_fused = prepare_fused_params(w_mu, b_mu, w_std, b_std)

    z, mu, logvar = reparameterize_forward(x, w_fused, b_fused, eps)
    jax.block_until_ready((z, mu, logvar))

    # Host reference: inputs/weights rounded to bf16 (matching the kernel's MXU inputs),
    # matmul + elementwise in float32 (matching the kernel's f32 accumulation/epilogue).
    def bf16(a):
        return np.asarray(jnp.asarray(a).astype(jnp.bfloat16).astype(jnp.float32))

    x_flat = bf16(x).reshape(B, n_flatten)
    mu_ref = x_flat @ bf16(w_mu) + np.asarray(b_mu)
    logvar_ref = x_flat @ bf16(w_std) + np.asarray(b_std)
    z_ref = np.asarray(eps) * np.exp(0.5 * logvar_ref) + mu_ref

    np.testing.assert_allclose(np.asarray(mu), mu_ref, rtol=2e-3, atol=2e-3)
    np.testing.assert_allclose(np.asarray(logvar), logvar_ref, rtol=2e-3, atol=2e-3)
    np.testing.assert_allclose(np.asarray(z), z_ref, rtol=2e-3, atol=2e-3)

    print("KERNEL_OK")
</pallas_src>

<mosaic_0001>
module attributes {stable_mosaic.version = 11 : i64} {
  func.func @_reparam_kernel(%arg0: i32, %arg1: i32, %arg2: memref<8x1024xbf16, #tpu.memory_space<vmem>>, %arg3: memref<1024x128xbf16, #tpu.memory_space<vmem>>, %arg4: memref<1x128xf32, #tpu.memory_space<vmem>>, %arg5: memref<8x32xf32, #tpu.memory_space<vmem>>, %arg6: memref<8x32xf32, #tpu.memory_space<vmem>>, %arg7: memref<8x32xf32, #tpu.memory_space<vmem>>, %arg8: memref<8x32xf32, #tpu.memory_space<vmem>>, %arg9: memref<8x128xf32, #tpu.memory_space<vmem>>) attributes {dimension_semantics = [#tpu.dimension_semantics<parallel>, #tpu.dimension_semantics<arbitrary>], iteration_bounds = array<i64: 1, 1>, scalar_prefetch = 0 : i64, scratch_operands = 1 : i64, tpu.core_type = #tpu.core_type<tc>, window_params = [{transform_indices = @transform_0, window_bounds = array<i64: 8, 1024>}, {transform_indices = @transform_1, window_bounds = array<i64: 1024, 128>}, {pipeline_mode = #tpu.pipeline_mode<synchronous>, transform_indices = @transform_2, window_bounds = array<i64: 1, 128>}, {transform_indices = @transform_3, window_bounds = array<i64: 8, 32>}, {transform_indices = @transform_4, window_bounds = array<i64: 8, 32>}, {transform_indices = @transform_5, window_bounds = array<i64: 8, 32>}, {transform_indices = @transform_6, window_bounds = array<i64: 8, 32>}]} {
    %c0_i32 = arith.constant 0 : i32
    %0 = arith.cmpi eq, %arg1, %c0_i32 : i32
    %1 = arith.extui %0 : i1 to i32
    %c0_i32_0 = arith.constant 0 : i32
    %2 = arith.cmpi ne, %1, %c0_i32_0 : i32
    scf.if %2 {
      %c0_10 = arith.constant 0 : index
      %c0_11 = arith.constant 0 : index
      %12 = vector.load %arg4[%c0_10, %c0_11] : memref<1x128xf32, #tpu.memory_space<vmem>>, vector<1x128xf32>
      %13 = vector.shape_cast %12 : vector<1x128xf32> to vector<1x128xf32>
      %14 = vector.broadcast %13 : vector<1x128xf32> to vector<8x128xf32>
      %c0_12 = arith.constant 0 : index
      %c0_13 = arith.constant 0 : index
      %15 = vector.load %arg9[%c0_12, %c0_13] : memref<8x128xf32, #tpu.memory_space<vmem>>, vector<8x128xf32>
      tpu.vector_store %arg9[%c0_12, %c0_13], %14 {strides = array<i32>} : memref<8x128xf32, #tpu.memory_space<vmem>>, vector<8x128xf32>,
    } else {
    }
    %c0 = arith.constant 0 : index
    %c0_1 = arith.constant 0 : index
    %3 = vector.load %arg9[%c0, %c0_1] : memref<8x128xf32, #tpu.memory_space<vmem>>, vector<8x128xf32>
    %c0_2 = arith.constant 0 : index
    %c0_3 = arith.constant 0 : index
    %4 = vector.load %arg2[%c0_2, %c0_3] : memref<8x1024xbf16, #tpu.memory_space<vmem>>, vector<8x1024xbf16>
    %c0_4 = arith.constant 0 : index
    %c0_5 = arith.constant 0 : index
    %5 = vector.load %arg3[%c0_4, %c0_5] : memref<1024x128xbf16, #tpu.memory_space<vmem>>, vector<1024x128xbf16>
    %cst = arith.constant dense<0.000000e+00> : vector<8x128xf32>
    %6 = tpu.matmul %4, %5, %cst {dimension_numbers = #tpu.dot_dimension_numbers<[1], [0], [0], [1], [0, 0, 1, 1], [], []>} : vector<8x1024xbf16>, vector<1024x128xbf16>, vector<8x128xf32> -> vector<8x128xf32>
    %7 = arith.addf %3, %6 : vector<8x128xf32>
    %c0_6 = arith.constant 0 : index
    %c0_7 = arith.constant 0 : index
    %8 = vector.load %arg9[%c0_6, %c0_7] : memref<8x128xf32, #tpu.memory_space<vmem>>, vector<8x128xf32>
    tpu.vector_store %arg9[%c0_6, %c0_7], %7 {strides = array<i32>} : memref<8x128xf32, #tpu.memory_space<vmem>>, vector<8x128xf32>,
    %c0_i32_8 = arith.constant 0 : i32
    %9 = arith.cmpi eq, %arg1, %c0_i32_8 : i32
    %10 = arith.extui %9 : i1 to i32
    %c0_i32_9 = arith.constant 0 : i32
    %11 = arith.cmpi ne, %10, %c0_i32_9 : i32
    scf.if %11 {
      %c0_10 = arith.constant 0 : index
      %c0_11 = arith.constant 0 : index
      %12 = vector.load %arg9[%c0_10, %c0_11] : memref<8x128xf32, #tpu.memory_space<vmem>>, vector<8x128xf32>
      %13 = vector.extract_strided_slice %12 {offsets = [0, 0], sizes = [8, 32], strides = [1, 1]} : vector<8x128xf32> to vector<8x32xf32>
      %14 = vector.extract_strided_slice %12 {offsets = [0, 32], sizes = [8, 32], strides = [1, 1]} : vector<8x128xf32> to vector<8x32xf32>
      %cst_12 = arith.constant 5.000000e-01 : f32
      %15 = vector.broadcast %cst_12 : f32 to vector<8x32xf32>
      %16 = arith.mulf %15, %14 : vector<8x32xf32>
      %17 = math.exp %16 : vector<8x32xf32>
      %c0_13 = arith.constant 0 : index
      %c0_14 = arith.constant 0 : index
      %18 = vector.load %arg5[%c0_13, %c0_14] : memref<8x32xf32, #tpu.memory_space<vmem>>, vector<8x32xf32>
      %19 = arith.mulf %18, %17 : vector<8x32xf32>
      %20 = arith.addf %19, %13 : vector<8x32xf32>
      %c0_15 = arith.constant 0 : index
      %c0_16 = arith.constant 0 : index
      %21 = vector.load %arg6[%c0_15, %c0_16] : memref<8x32xf32, #tpu.memory_space<vmem>>, vector<8x32xf32>
      tpu.vector_store %arg6[%c0_15, %c0_16], %20 {strides = array<i32>} : memref<8x32xf32, #tpu.memory_space<vmem>>, vector<8x32xf32>,
      %c0_17 = arith.constant 0 : index
      %c0_18 = arith.constant 0 : index
      %22 = vector.load %arg7[%c0_17, %c0_18] : memref<8x32xf32, #tpu.memory_space<vmem>>, vector<8x32xf32>
      tpu.vector_store %arg7[%c0_17, %c0_18], %13 {strides = array<i32>} : memref<8x32xf32, #tpu.memory_space<vmem>>, vector<8x32xf32>,
      %c0_19 = arith.constant 0 : index
      %c0_20 = arith.constant 0 : index
      %23 = vector.load %arg8[%c0_19, %c0_20] : memref<8x32xf32, #tpu.memory_space<vmem>>, vector<8x32xf32>
      tpu.vector_store %arg8[%c0_19, %c0_20], %14 {strides = array<i32>} : memref<8x32xf32, #tpu.memory_space<vmem>>, vector<8x32xf32>,
    } else {
    }
    return
  }
  func.func @transform_0(%arg0: i32, %arg1: i32) -> (i32, i32) {
    %c0_i32 = arith.constant 0 : i32
    return %arg0, %arg1 : i32, i32
  }
  func.func @transform_1(%arg0: i32, %arg1: i32) -> (i32, i32) {
    %c0_i32 = arith.constant 0 : i32
    %c0_i32_0 = arith.constant 0 : i32
    return %arg1, %c0_i32 : i32, i32
  }
  func.func @transform_2(%arg0: i32, %arg1: i32) -> (i32, i32) {
    %c0_i32 = arith.constant 0 : i32
    %c0_i32_0 = arith.constant 0 : i32
    %c0_i32_1 = arith.constant 0 : i32
    return %c0_i32, %c0_i32_0 : i32, i32
  }
  func.func @transform_3(%arg0: i32, %arg1: i32) -> (i32, i32) {
    %c0_i32 = arith.constant 0 : i32
    %c0_i32_0 = arith.constant 0 : i32
    return %arg0, %c0_i32 : i32, i32
  }
  func.func @transform_4(%arg0: i32, %arg1: i32) -> (i32, i32) {
    %c0_i32 = arith.constant 0 : i32
    %c0_i32_0 = arith.constant 0 : i32
    return %arg0, %c0_i32 : i32, i32
  }
  func.func @transform_5(%arg0: i32, %arg1: i32) -> (i32, i32) {
    %c0_i32 = arith.constant 0 : i32
    %c0_i32_0 = arith.constant 0 : i32
    return %arg0, %c0_i32 : i32, i32
  }
  func.func @transform_6(%arg0: i32, %arg1: i32) -> (i32, i32) {
    %c0_i32 = arith.constant 0 : i32
    %c0_i32_0 = arith.constant 0 : i32
    return %arg0, %c0_i32 : i32, i32
  }
}

</mosaic_0001>

<bundles_post_ra>
// kernel: tpu_custom_call.1
= control target key start
LH: loop header
LB: loop body
LE: loop exit
PB: predicated region body
PF: predicated region fallthrough
CT: control target
= control target key end

     0   :  { %12 = vsyncpa [#allocation4], 0  ;;  %s1348_s0 = inlined_call_operand.hbm [shape: bf16[8,1024], index: 0, kind: input, shape index: {}]   ;;  %s1349_s1 = inlined_call_operand.hbm [shape: bf16[1024,128], index: 1, kind: input, shape index: {}]   ;;  %s1350_s2 = inlined_call_operand.vmem [shape: f32[1,128], index: 2, kind: input, shape index: {}]   ;;  %s1351_s3 = inlined_call_operand.hbm [shape: f32[8,32], index: 3, kind: input, shape index: {}]   ;;  %s1352_s4 = inlined_call_operand.hbm [shape: f32[8,32], index: 4, kind: output, shape index: {0}]   ;;  %s1353_s5 = inlined_call_operand.hbm [shape: f32[8,32], index: 5, kind: output, shape index: {1}]   ;;  %s1354_s6 = inlined_call_operand.hbm [shape: f32[8,32], index: 6, kind: output, shape index: {2}]  }
   0x1   :  { %13 = vsyncpa [#allocation7], 0 }
   0x2   :  { %14 = vsyncpa [#allocation5], 0  ;;  %s31_s23 = sshll.u32 %s1349_s1, 4  ;;  %s32_s23 = int_to_ptr.hbm [resolvable:$true] %s31_s23 }
   0x3   :  { %15 = vsyncpa [#allocation11], 0  ;;  %s1280_s24 = smov [#allocation6]   ;;  %s21_s28 = sshll.u32 %s1348_s0, 4  ;;  %s22_s28 = int_to_ptr.hbm [resolvable:$true] %s21_s28 }
   0x4   :  { %s33_s25 = sshll.u32 %s1280_s24, 4  ;;  %s1281_s29 = smov 64   ;;  %s34_s25 = int_to_ptr.vmem [resolvable:$true] %s33_s25 }
   0x5   :  { %s1282_s30 = smov 4   ;;  %s1283_s7 = smov [#allocation3]  }
   0x6   :  { %39 = dma.hbm_to_vmem [thread:$0]  %s32_s23, 8192, %s34_s25, [#allocation7], %s1281_s29, %s1281_s29, %s1282_s30  }
   0x7   :  { %s23_s8 = sshll.u32 %s1283_s7, 4  ;;  %s47_s11 = sshll.u32 %s1351_s3, 4  ;;  %s24_s8 = int_to_ptr.vmem [resolvable:$true] %s23_s8  ;;  %s48_s11 = int_to_ptr.hbm [resolvable:$true] %s47_s11 }
   0x8   :  { %26 = dma.hbm_to_vmem [thread:$0]  %s22_s28, 512, %s24_s8, [#allocation4]  }
   0x9   :  { %s1284_s1 = smov [#allocation8]  }
   0xa   :  { %s49_s12 = sshll.u32 %s1284_s1, 4  ;;  %s50_s12 = int_to_ptr.vmem [resolvable:$true] %s49_s12 }
   0xb   :  { %52 = dma.hbm_to_vmem [thread:$0]  %s48_s11, 128, %s50_s12, [#allocation7]  }
   0xc   :  { %1272 = dma.done.wait [#allocation4], 512  }
   0xd   :  { %1273 = vsyncadd [#allocation4], 4294966784 }
   0xe   :  { %1274 = dma.done.wait [#allocation7], 8320  }
   0xf   :  { %1275 = vsyncadd [#allocation7], 4294958976  ;;  %v1059_v0 = vld [vmem:[#allocation6 + $0x38] sm:$0xff]  ;;  %v1058_v4 = vld [vmem:[#allocation6 + $0x30] sm:$0xff]  ;;  %vm739_vm0 = vcmask 261120   ;;  %s1285_s13 = smov [#allocation10]  }
  0x10   :  { %v1067_v1 = vld [vmem:[#allocation6 + $0x78] sm:$0xff]  ;;  %619 = vmatpush.bf16.msra.mxu0 %v1059_v0  ;;  %v1066_v5 = vld [vmem:[#allocation6 + $0x70] sm:$0xff]  ;;  %v1057_v8 = vld [vmem:[#allocation6 + $0x28] sm:$0xff]  ;;  %s763_s14 = sshll.u32 %s1285_s13, 4  ;;  %s765_s17 = sshll.u32 %s1353_s5, 4  ;;  %s764_s14 = int_to_ptr.vmem [resolvable:$true] %s763_s14  ;;  %s766_s17 = int_to_ptr.hbm [resolvable:$true] %s765_s17 }
  0x11   :  { %v1075_v2 = vld [vmem:[#allocation6 + $0xb8] sm:$0xff]  ;;  %632 = vmatpush.bf16.msra.mxu1 %v1067_v1  ;;  %v1074_v6 = vld [vmem:[#allocation6 + $0xb0] sm:$0xff]  ;;  %v1065_v9 = vld [vmem:[#allocation6 + $0x68] sm:$0xff]  ;;  %s1287_s18 = smov [#allocation9]   ;;  %s754_s22 = sshll.u32 %s1352_s4, 4  ;;  %s755_s22 = int_to_ptr.hbm [resolvable:$true] %s754_s22 }
  0x12   :  { %v1083_v3 = vld [vmem:[#allocation6 + $0xf8] sm:$0xff]  ;;  %645 = vmatpush.bf16.msra.mxu2 %v1075_v2  ;;  %v1082_v7 = vld [vmem:[#allocation6 + $0xf0] sm:$0xff]  ;;  %v1073_v10 = vld [vmem:[#allocation6 + $0xa8] sm:$0xff]  ;;  %s752_s19 = sshll.u32 %s1287_s18, 4  ;;  %s1288_s5 = smov [#allocation12]   ;;  %s753_s19 = int_to_ptr.vmem [resolvable:$true] %s752_s19 }
  0x13   :  { %658 = vmatpush.bf16.msra.mxu3 %v1083_v3  ;;  %v1081_v11 = vld [vmem:[#allocation6 + $0xe8] sm:$0xff]  ;;  %v1056_v12 = vld [vmem:[#allocation6 + $0x20] sm:$0xff]  ;;  %v1055_v16 = vld [vmem:[#allocation6 + $0x18] sm:$0xff]  ;;  %s774_s23 = sshll.u32 %s1288_s5, 4  ;;  %s776_s26 = sshll.u32 %s1354_s6, 4  ;;  %s775_s23 = int_to_ptr.vmem [resolvable:$true] %s774_s23  ;;  %s777_s26 = int_to_ptr.hbm [resolvable:$true] %s776_s26 }
  0x14   :  { %620 = vmatpush.bf16.msra.mxu0 %v1058_v4  ;;  %v1064_v13 = vld [vmem:[#allocation6 + $0x60] sm:$0xff]  ;;  %v1063_v17 = vld [vmem:[#allocation6 + $0x58] sm:$0xff]  ;;  %v1054_v20 = vld [vmem:[#allocation6 + $0x10] sm:$0xff] }
  0x15   :  { %633 = vmatpush.bf16.msra.mxu1 %v1066_v5  ;;  %v1072_v14 = vld [vmem:[#allocation6 + $0xa0] sm:$0xff]  ;;  %v1071_v18 = vld [vmem:[#allocation6 + $0x98] sm:$0xff]  ;;  %v1062_v21 = vld [vmem:[#allocation6 + $0x50] sm:$0xff] }
  0x16   :  { %646 = vmatpush.bf16.msra.mxu2 %v1074_v6  ;;  %v1080_v15 = vld [vmem:[#allocation6 + $0xe0] sm:$0xff]  ;;  %v1079_v19 = vld [vmem:[#allocation6 + $0xd8] sm:$0xff]  ;;  %v1070_v22 = vld [vmem:[#allocation6 + $0x90] sm:$0xff] }
  0x17   :  { %659 = vmatpush.bf16.msra.mxu3 %v1082_v7  ;;  %v1078_v23 = vld [vmem:[#allocation6 + $0xd0] sm:$0xff]  ;;  %v1053_v24 = vld [vmem:[#allocation6 + $0x8] sm:$0xff]  ;;  %v75_v29 = vld [vmem:[#allocation3] sm:$0xff] }
  0x18   :  { %621 = vmatpush.bf16.msra.mxu0 %v1057_v8  ;;  %v1061_v25 = vld [vmem:[#allocation6 + $0x48] sm:$0xff]  ;;  %v1052_v30 = vld [vmem:[#allocation6] sm:$0xff]  ;;  %v211_v33 = vunpack.c.l.b16 %v75_v29  ;;  %v212_v37 = vunpack.c.h.b16 %v75_v29  ;;  %v1091_v38 = vld [vmem:[#allocation6 + $0x138] sm:$0xff] }
  0x19   :  { %634 = vmatpush.bf16.msra.mxu1 %v1065_v9  ;;  %v1069_v26 = vld [vmem:[#allocation6 + $0x88] sm:$0xff]  ;;  %v1060_v31 = vld [vmem:[#allocation6 + $0x40] sm:$0xff]  ;;  %v1099_v39 = vld [vmem:[#allocation6 + $0x178] sm:$0xff] }
  0x1a   :  { %647 = vmatpush.bf16.msra.mxu2 %v1073_v10  ;;  %v1077_v27 = vld [vmem:[#allocation6 + $0xc8] sm:$0xff]  ;;  %v1068_v34 = vld [vmem:[#allocation6 + $0x80] sm:$0xff]  ;;  %v1107_v40 = vld [vmem:[#allocation6 + $0x1b8] sm:$0xff]  ;;  %v219_v43 = vpack.c.b16 %v211_v33, %v211_v33  ;;  %v220_v45 = vpack.c.b16 %v212_v37, %v212_v37 }
  0x1b   :  { %660 = vmatpush.bf16.msra.mxu3 %v1081_v11  ;;  %v76_v28 = vld [vmem:[#allocation3 + $0x8] sm:$0xff]  ;;  %v1076_v35 = vld [vmem:[#allocation6 + $0xc0] sm:$0xff]  ;;  %v1115_v41 = vld [vmem:[#allocation6 + $0x1f8] sm:$0xff] }
  0x1c   :  { %622 = vmatpush.bf16.msra.mxu0 %v1056_v12  ;;  %v213_v32 = vunpack.c.l.b16 %v76_v28  ;;  %v214_v36 = vunpack.c.h.b16 %v76_v28  ;;  %v1090_v46 = vld [vmem:[#allocation6 + $0x130] sm:$0xff]  ;;  %v1089_v50 = vld [vmem:[#allocation6 + $0x128] sm:$0xff]  ;;  %v1088_v54 = vld [vmem:[#allocation6 + $0x120] sm:$0xff] }
  0x1d   :  { %635 = vmatpush.bf16.msra.mxu1 %v1064_v13  ;;  %v1098_v47 = vld [vmem:[#allocation6 + $0x170] sm:$0xff]  ;;  %v1097_v51 = vld [vmem:[#allocation6 + $0x168] sm:$0xff]  ;;  %v1096_v55 = vld [vmem:[#allocation6 + $0x160] sm:$0xff] }
  0x1e   :  { %648 = vmatpush.bf16.msra.mxu2 %v1072_v14  ;;  %v221_v42 = vpack.c.b16 %v213_v32, %v213_v32  ;;  %v222_v44 = vpack.c.b16 %v214_v36, %v214_v36  ;;  %v1106_v48 = vld [vmem:[#allocation6 + $0x1b0] sm:$0xff]  ;;  %v1105_v52 = vld [vmem:[#allocation6 + $0x1a8] sm:$0xff]  ;;  %v1104_v56 = vld [vmem:[#allocation6 + $0x1a0] sm:$0xff] }
  0x1f   :  { %661 = vmatpush.bf16.msra.mxu3 %v1080_v15  ;;  %v1114_v49 = vld [vmem:[#allocation6 + $0x1f0] sm:$0xff]  ;;  %v1113_v53 = vld [vmem:[#allocation6 + $0x1e8] sm:$0xff]  ;;  %v1112_v57 = vld [vmem:[#allocation6 + $0x1e0] sm:$0xff] }
  0x20   :  { %623 = vmatpush.bf16.msra.mxu0 %v1055_v16  ;;  %v1087_v58 = vld [vmem:[#allocation6 + $0x118] sm:$0xff]  ;;  %v1086_v62 = vld [vmem:[#allocation6 + $0x110] sm:$0xff]  ;;  %v1085_v2 = vld [vmem:[#allocation6 + $0x108] sm:$0xff] }
  0x21   :  { %636 = vmatpush.bf16.msra.mxu1 %v1063_v17  ;;  %v1095_v59 = vld [vmem:[#allocation6 + $0x158] sm:$0xff]  ;;  %v1094_v63 = vld [vmem:[#allocation6 + $0x150] sm:$0xff]  ;;  %v1093_v3 = vld [vmem:[#allocation6 + $0x148] sm:$0xff] }
  0x22   :  { %649 = vmatpush.bf16.msra.mxu2 %v1071_v18  ;;  %v1103_v60 = vld [vmem:[#allocation6 + $0x198] sm:$0xff]  ;;  %v1102_v0 = vld [vmem:[#allocation6 + $0x190] sm:$0xff]  ;;  %v1101_v5 = vld [vmem:[#allocation6 + $0x188] sm:$0xff] }
  0x23   :  { %662 = vmatpush.bf16.msra.mxu3 %v1079_v19  ;;  %v1111_v61 = vld [vmem:[#allocation6 + $0x1d8] sm:$0xff]  ;;  %v1110_v1 = vld [vmem:[#allocation6 + $0x1d0] sm:$0xff]  ;;  %v1109_v6 = vld [vmem:[#allocation6 + $0x1c8] sm:$0xff] }
  0x24   :  { %624 = vmatpush.bf16.msra.mxu0 %v1054_v20  ;;  %v77_v4 = vld [vmem:[#allocation3 + $0x10] sm:$0xff]  ;;  %v78_v7 = vld [vmem:[#allocation3 + $0x18] sm:$0xff]  ;;  %v1084_v10 = vld [vmem:[#allocation6 + $0x100] sm:$0xff] }
  0x25   :  { %637 = vmatpush.bf16.msra.mxu1 %v1062_v21  ;;  %v215_v8 = vunpack.c.l.b16 %v77_v4  ;;  %v216_v9 = vunpack.c.h.b16 %v77_v4  ;;  %v1092_v11 = vld [vmem:[#allocation6 + $0x140] sm:$0xff]  ;;  %v217_v12 = vunpack.c.l.b16 %v78_v7  ;;  %v218_v13 = vunpack.c.h.b16 %v78_v7 }
  0x26   :  { %650 = vmatpush.bf16.msra.mxu2 %v1070_v22  ;;  %v1100_v14 = vld [vmem:[#allocation6 + $0x180] sm:$0xff] }
  0x27   :  { %663 = vmatpush.bf16.msra.mxu3 %v1078_v23  ;;  %v1108_v15 = vld [vmem:[#allocation6 + $0x1c0] sm:$0xff]  ;;  %v223_v16 = vpack.c.b16 %v215_v8, %v215_v8  ;;  %v224_v17 = vpack.c.b16 %v216_v9, %v216_v9  ;;  %v225_v18 = vpack.c.b16 %v217_v12, %v217_v12  ;;  %v226_v19 = vpack.c.b16 %v218_v13, %v218_v13 }
  0x28   :  { %625 = vmatpush.bf16.msra.mxu0 %v1053_v24 }
  0x29   :  { %638 = vmatpush.bf16.msra.mxu1 %v1061_v25 }
  0x2a   :  { %651 = vmatpush.bf16.msra.mxu2 %v1069_v26 }
  0x2b   :  { %664 = vmatpush.bf16.msra.mxu3 %v1077_v27 }
  0x2c   :  { %626 = vmatpush.bf16.msra.mxu0 %v1052_v30 }
  0x2d   :  { %639 = vmatpush.bf16.msra.mxu1 %v1060_v31 }
  0x2e   :  { %652 = vmatpush.bf16.msra.mxu2 %v1068_v34 }
  0x2f   :  { %665 = vmatpush.bf16.msra.mxu3 %v1076_v35  ;;  %627 = vmatmul.bf16.vlgmr.msra.gmra.mxu0 %v219_v43 }
  0x30   :  { %671 = vmatpush.bf16.msrb.mxu0 %v1091_v38  ;;  %640 = vmatmul.bf16.vlgmr.msra.gmra.mxu1 %v220_v45  ;;  %v1125_v38 = vld [vmem:[%s1350_s2] ss:$0 sm:$0xff]  ;;  %s1286_s2 = smov 96  }
  0x31   :  { %684 = vmatpush.bf16.msrb.mxu1 %v1099_v39  ;;  %653 = vmatmul.bf16.vlgmr.msra.gmra.mxu2 %v221_v42 }
  0x32   :  { %697 = vmatpush.bf16.msrb.mxu2 %v1107_v40  ;;  %666 = vmatmul.bf16.vlgmr.msra.gmra.mxu3 %v222_v44 }
  0x33   :  { %710 = vmatpush.bf16.msrb.mxu3 %v1115_v41 }
  0x34   :  { %672 = vmatpush.bf16.msrb.mxu0 %v1090_v46 }
  0x35   :  { %685 = vmatpush.bf16.msrb.mxu1 %v1098_v47 }
  0x36   :  { %698 = vmatpush.bf16.msrb.mxu2 %v1106_v48  ;;  %v732_v48 = vld [vmem:[#allocation8] sm:$0xff] }
  0x37   :  { %711 = vmatpush.bf16.msrb.mxu3 %v1114_v49 }
  0x38   :  { %673 = vmatpush.bf16.msrb.mxu0 %v1089_v50 }
  0x39   :  { %686 = vmatpush.bf16.msrb.mxu1 %v1097_v51 }
  0x3a   :  { %699 = vmatpush.bf16.msrb.mxu2 %v1105_v52 }
  0x3b   :  { %712 = vmatpush.bf16.msrb.mxu3 %v1113_v53 }
  0x3c   :  { %674 = vmatpush.bf16.msrb.mxu0 %v1088_v54 }
  0x3d   :  { %687 = vmatpush.bf16.msrb.mxu1 %v1096_v55 }
  0x3e   :  { %700 = vmatpush.bf16.msrb.mxu2 %v1104_v56 }
  0x3f   :  { %713 = vmatpush.bf16.msrb.mxu3 %v1112_v57 }
  0x40   :  { %675 = vmatpush.bf16.msrb.mxu0 %v1087_v58 }
  0x41   :  { %688 = vmatpush.bf16.msrb.mxu1 %v1095_v59 }
  0x42   :  { %701 = vmatpush.bf16.msrb.mxu2 %v1103_v60 }
  0x43   :  { %714 = vmatpush.bf16.msrb.mxu3 %v1111_v61 }
  0x44   :  { %676 = vmatpush.bf16.msrb.mxu0 %v1086_v62 }
  0x45   :  { %689 = vmatpush.bf16.msrb.mxu1 %v1094_v63 }
  0x46   :  { %702 = vmatpush.bf16.msrb.mxu2 %v1102_v0 }
  0x47   :  { %715 = vmatpush.bf16.msrb.mxu3 %v1110_v1 }
  0x48   :  { %677 = vmatpush.bf16.msrb.mxu0 %v1085_v2 }
  0x49   :  { %690 = vmatpush.bf16.msrb.mxu1 %v1093_v3 }
  0x4a   :  { %703 = vmatpush.bf16.msrb.mxu2 %v1101_v5 }
  0x4b   :  { %716 = vmatpush.bf16.msrb.mxu3 %v1109_v6 }
  0x4c   :  { %678 = vmatpush.bf16.msrb.mxu0 %v1084_v10 }
  0x4d   :  { %691 = vmatpush.bf16.msrb.mxu1 %v1092_v11 }
  0x4e   :  { %704 = vmatpush.bf16.msrb.mxu2 %v1100_v14 }
  0x4f   :  { %717 = vmatpush.bf16.msrb.mxu3 %v1108_v15  ;;  %679 = vmatmul.bf16.vlgmr.msrb.gmra.mxu0 %v223_v16 }
  0x50   :  { %692 = vmatmul.bf16.vlgmr.msrb.gmra.mxu1 %v224_v17 }
  0x51   :  { %705 = vmatmul.bf16.vlgmr.msrb.gmra.mxu2 %v225_v18 }
  0x52   :  { %718 = vmatmul.bf16.vlgmr.msrb.gmra.mxu3 %v226_v19 }
  0xac   :  { %v628_v20 = vpop.f32.mrf.mxu0 }
  0xad   :  { %v641_v21 = vpop.f32.mrf.mxu1 }
  0xae   :  { %v642_v28 = vadd.f32 %v641_v21, %v628_v20 }
  0xb4   :  { %v654_v22 = vpop.f32.mrf.mxu2  ;;  %v630_v24 = vpop.f32.mrf.mxu0 }
  0xb5   :  { %v667_v23 = vpop.f32.mrf.mxu3  ;;  %v643_v25 = vpop.f32.mrf.mxu1  ;;  %v655_v29 = vadd.f32 %v654_v22, %v642_v28 }
  0xb7   :  { %v668_v30 = vadd.f32 %v667_v23, %v655_v29 }
  0xbc   :  { %v656_v26 = vpop.f32.mrf.mxu2 }
  0xbd   :  { %v669_v27 = vpop.f32.mrf.mxu3 }
  0xcc   :  { %v680_v31 = vpop.f32.mrf.mxu0 }
  0xcd   :  { %v693_v32 = vpop.f32.mrf.mxu1  ;;  %v681_v33 = vadd.f32 %v680_v31, %v668_v30 }
  0xcf   :  { %v694_v34 = vadd.f32 %v693_v32, %v681_v33 }
  0xd4   :  { %v706_v35 = vpop.f32.mrf.mxu2  ;;  %v682_v39 = vpop.f32.mrf.mxu0 }
  0xd5   :  { %v719_v36 = vpop.f32.mrf.mxu3  ;;  %v707_v37 = vadd.f32 %v706_v35, %v694_v34  ;;  %v695_v40 = vpop.f32.mrf.mxu1 }
  0xd7   :  { %v720_v41 = vadd.f32 %v719_v36, %v707_v37 }
  0xd9   :  { %v723_v42 = vadd.f32 %v1125_v38, %v720_v41 }
  0xdb   :  { %v729_v43 = vmul.f32 0.5, %v723_v42  ;;  %741 = vst.msk [vmem:[#allocation10] sm:$0xff] %vm739_vm0, %v723_v42 }
  0xdc   :  { %v708_v44 = vpop.f32.mrf.mxu2  ;;  %768 = dma.vmem_to_hbm [thread:$0]  %s764_s14, 128, %s766_s17, [#allocation11]  }
  0xdd   :  { %v721_v45 = vpop.f32.mrf.mxu3  ;;  %v730_v46 = vmul.f32 1.442695, %v729_v43 }
  0xdf   :  { %1126 = vpow2.f32 %v730_v46 }
  0xe5   :  { %v1127_v47 = vpop.eup %1126 }
  0xe6   :  { %734 = vrot.lane.b32.xlu0 %v1127_v47, %s1286_s2 }
  0xee   :  { %743 = vrot.lane.b32.xlu0 %v723_v42, %s1286_s2 }
 0x158   :  { %v735_v49 = vpop.permute.xlu0 %734 }
 0x159   :  { %v737_v50 = vmul.f32 %v735_v49, %v732_v48 }
 0x15b   :  { %v738_v51 = vadd.f32 %v737_v50, %v723_v42 }
 0x15d   :  { %740 = vst.msk [vmem:[#allocation9] sm:$0xff] %vm739_vm0, %v738_v51 }
 0x15e   :  { %757 = dma.vmem_to_hbm [thread:$0]  %s753_s19, 128, %s755_s22, [#allocation5]  }
 0x160   :  { %v744_v52 = vpop.permute.xlu0 %743 }
 0x161   :  { %746 = vst.msk [vmem:[#allocation12] sm:$0xff] %vm739_vm0, %v744_v52 }
 0x162   :  { %779 = dma.vmem_to_hbm [thread:$0]  %s775_s23, 128, %s777_s26, [#allocation11]  }
 0x163   :  { %1276 = dma.done.wait [#allocation5], 128  }
 0x164   :  { %1277 = vsyncadd [#allocation5], 4294967168 }
 0x165   :  { %1278 = dma.done.wait [#allocation11], 256  }
 0x166   :  { %1279 = vsyncadd [#allocation11], 4294967040 }
 0x167   :  { %792 = vsyncpa [#allocation4], 1 }
 0x168   :  { %793 = vsyncpa [#allocation7], 1 }
 0x169   :  { %794 = vsyncpa [#allocation5], 1 }
 0x16a   :  { %795 = vsyncpa [#allocation11], 1 }

</bundles_post_ra>
